<compile_context>
chip_gen: v5e
topology: v5e:2x2
jax: 0.10.0
libtpu: 0.0.40
codegen_flags: <defaults>
</compile_context>

<pallas_src>
import functools

import jax
import jax.numpy as jnp
from jax import lax
from jax.experimental import pallas as pl
from jax.experimental.pallas import tpu as pltpu


def _mean_pool_kernel(x_ref, o_ref, acc_ref, *, inv_n, n_true, tn, ragged_n):
    # x_ref block: (TB, TN, TD); o_ref block: (TB, TD); acc_ref: (TB, TD) f32.
    # Grid: (B-tiles, D-tiles, N-tiles); reduction over the last grid axis.
    k = pl.program_id(2)
    last = pl.num_programs(2) - 1

    @pl.when(k == 0)
    def _init():
        acc_ref[...] = jnp.zeros_like(acc_ref)

    if ragged_n:
        # Only the last N block is partial; mask it, keep full blocks unmasked.
        @pl.when(k != last)
        def _full():
            acc_ref[...] += jnp.sum(x_ref[...], axis=1, dtype=jnp.float32)

        @pl.when(k == last)
        def _tail():
            x = x_ref[...]
            rem = n_true - k * tn  # number of valid instances in this block
            idx = lax.broadcasted_iota(jnp.int32, x.shape, 1)
            x = jnp.where(idx < rem, x, jnp.zeros_like(x))
            acc_ref[...] += jnp.sum(x, axis=1, dtype=jnp.float32)
    else:
        acc_ref[...] += jnp.sum(x_ref[...], axis=1, dtype=jnp.float32)

    @pl.when(k == last)
    def _finalize():
        # Divide exactly once per output element, using the true N.
        o_ref[...] = (acc_ref[...] * inv_n).astype(o_ref.dtype)


def _round_down(x, m):
    return (x // m) * m


def _chip_budgets():
    """(target_block_bytes, vmem_limit_bytes) per chip generation."""
    try:
        info = pltpu.get_tpu_info()
        vmem_phys = getattr(info, "vmem_capacity_bytes", None)
    except Exception:
        vmem_phys = None
    if vmem_phys is None:
        # Conservative fallback: safe on every generation (incl. v7x's 64 MiB).
        return 8 << 20, 40 << 20
    if vmem_phys >= (100 << 20):
        # v5e / v6e class: 128 MiB physical VMEM -> bigger streaming tiles.
        return 12 << 20, 64 << 20
    # v7x class: 64 MiB physical VMEM, but ~2.3x HBM BW -> VMEM-safe tiles.
    return 10 << 20, 48 << 20


def mean_pooling(feats, *, target_block_bytes=None, vmem_limit_bytes=None):
    """Mean over the instance axis (axis=1) of a (B, N, D) array."""
    B, N, D = feats.shape
    out_dtype = feats.dtype
    itemsize = jnp.dtype(out_dtype).itemsize

    auto_block, auto_vmem = _chip_budgets()
    if target_block_bytes is None:
        target_block_bytes = auto_block
    if vmem_limit_bytes is None:
        vmem_limit_bytes = auto_vmem

    # Sublane granularity for this dtype: f32 -> 8, bf16/f16 -> 16, int8 -> 32.
    sub = max(8, 32 // max(1, itemsize))

    # ---- feature (D) tile --------------------------------------------------
    # Keep D whole (lane-dense stores) unless there will be a single bag tile:
    # then split D so a 'parallel' grid axis has >= 2 blocks and both v7x
    # TensorCores get work. Harmless on single-TC v5e/v6e.
    if B <= sub and D >= 256 and D % 128 == 0:
        TD = 128 * max(1, (D // 128) // 2)
    else:
        TD = D
    nd = pl.cdiv(D, TD)

    # ---- bag (B) tile: sublane-aligned, adaptive for small-N/D problems -----
    if B <= sub:
        TB = B  # block == full dim is always legal
    else:
        TB = sub
        row_bytes_full_n = N * TD * itemsize
        rows_in_budget = target_block_bytes // max(1, row_bytes_full_n)
        if rows_in_budget > TB:
            # Grow TB to use the budget, but keep >= 2 B tiles and cap at 512.
            tb_cap = max(sub, min(512, _round_down(B // 2, sub)))
            TB = max(sub, min(_round_down(rows_in_budget, sub), tb_cap))
    nb = pl.cdiv(B, TB)

    # ---- instance (N) tile: reduction axis, sized by the INPUT itemsize -----
    bytes_per_instance_row = TB * TD * itemsize
    tn = max(1, target_block_bytes // bytes_per_instance_row)
    if tn >= N:
        TN = N  # single reduction step
    else:
        TN = min(N, max(sub, _round_down(tn, sub)))
    nn = pl.cdiv(N, TN)
    ragged_n = (N % TN) != 0

    kernel = functools.partial(
        _mean_pool_kernel,
        inv_n=float(1.0 / N),
        n_true=N,
        tn=TN,
        ragged_n=ragged_n,
    )

    out = pl.pallas_call(
        kernel,
        out_shape=jax.ShapeDtypeStruct((B, D), out_dtype),
        grid_spec=pltpu.PrefetchScalarGridSpec(
            num_scalar_prefetch=0,
            grid=(nb, nd, nn),
            in_specs=[pl.BlockSpec((TB, TN, TD), lambda i, j, k: (i, k, j))],
            out_specs=pl.BlockSpec((TB, TD), lambda i, j, k: (i, j)),
            scratch_shapes=[pltpu.VMEM((TB, TD), jnp.float32)],
        ),
        compiler_params=pltpu.CompilerParams(
            dimension_semantics=("parallel", "parallel", "arbitrary"),
            vmem_limit_bytes=vmem_limit_bytes,
        ),
        cost_estimate=pl.CostEstimate(
            flops=B * N * D,
            transcendentals=0,
            bytes_accessed=(B * N * D + B * D) * itemsize,
        ),
    )(feats)
    return out


if __name__ == "__main__":
    key = jax.random.PRNGKey(0)

    # Small shape consistent with the module: 2 bags, 8 instances, 32-dim feats.
    B, N, D = 2, 8, 32
    feats = jax.random.normal(key, (B, N, D), dtype=jnp.float32)
    out = jax.block_until_ready(mean_pooling(feats))
    ref = jnp.mean(feats, axis=1)
    assert out.shape == (B, D)
    assert jnp.allclose(out, ref, atol=1e-5, rtol=1e-5)

    # Ragged B and N tails + multi-step reduction: a small block budget forces
    # several k-steps and exercises the in-kernel tail mask (no jnp.pad used).
    B2, N2, D2 = 11, 37, 128
    feats2 = jax.random.normal(jax.random.PRNGKey(1), (B2, N2, D2), dtype=jnp.float32)
    out2 = jax.block_until_ready(mean_pooling(feats2, target_block_bytes=16 * 1024))
    ref2 = jnp.mean(feats2, axis=1)
    assert out2.shape == (B2, D2)
    assert jnp.allclose(out2, ref2, atol=1e-4, rtol=1e-4)

    # Small-B / wide-D path: D is split into parallel tiles (v7x megacore feed).
    B3, N3, D3 = 2, 16, 256
    feats3 = jax.random.normal(jax.random.PRNGKey(2), (B3, N3, D3), dtype=jnp.float32)
    out3 = jax.block_until_ready(mean_pooling(feats3))
    ref3 = jnp.mean(feats3, axis=1)
    assert out3.shape == (B3, D3)
    assert jnp.allclose(out3, ref3, atol=1e-5, rtol=1e-5)

    print("KERNEL_OK")
</pallas_src>

<mosaic_0001>
module attributes {stable_mosaic.version = 11 : i64} {
  func.func @_mean_pool_kernel(%arg0: i32, %arg1: i32, %arg2: i32, %arg3: memref<2x8x32xf32, #tpu.memory_space<vmem>>, %arg4: memref<2x32xf32, #tpu.memory_space<vmem>>, %arg5: memref<2x32xf32, #tpu.memory_space<vmem>>) attributes {dimension_semantics = [#tpu.dimension_semantics<parallel>, #tpu.dimension_semantics<parallel>, #tpu.dimension_semantics<arbitrary>], iteration_bounds = array<i64: 1, 1, 1>, scalar_prefetch = 0 : i64, scratch_operands = 1 : i64, tpu.core_type = #tpu.core_type<tc>, window_params = [{transform_indices = @transform_0, window_bounds = array<i64: 2, 8, 32>}, {transform_indices = @transform_1, window_bounds = array<i64: 2, 32>}]} {
    %c0_i32 = arith.constant 0 : i32
    %0 = arith.cmpi eq, %arg2, %c0_i32 : i32
    %1 = arith.extui %0 : i1 to i32
    %c0_i32_0 = arith.constant 0 : i32
    %2 = arith.cmpi ne, %1, %c0_i32_0 : i32
    scf.if %2 {
      %cst_9 = arith.constant 0.000000e+00 : f32
      %11 = vector.broadcast %cst_9 : f32 to vector<2x32xf32>
      %c0_10 = arith.constant 0 : index
      %c0_11 = arith.constant 0 : index
      %12 = vector.load %arg5[%c0_10, %c0_11] : memref<2x32xf32, #tpu.memory_space<vmem>>, vector<2x32xf32>
      tpu.vector_store %arg5[%c0_10, %c0_11], %11 {strides = array<i32>} : memref<2x32xf32, #tpu.memory_space<vmem>>, vector<2x32xf32>,
    } else {
    }
    %c0 = arith.constant 0 : index
    %c0_1 = arith.constant 0 : index
    %3 = vector.load %arg5[%c0, %c0_1] : memref<2x32xf32, #tpu.memory_space<vmem>>, vector<2x32xf32>
    %c0_2 = arith.constant 0 : index
    %c0_3 = arith.constant 0 : index
    %c0_4 = arith.constant 0 : index
    %4 = vector.load %arg3[%c0_2, %c0_3, %c0_4] : memref<2x8x32xf32, #tpu.memory_space<vmem>>, vector<2x8x32xf32>
    %cst = arith.constant dense<0.000000e+00> : vector<2x32xf32>
    %5 = vector.multi_reduction <add>, %4, %cst [1] : vector<2x8x32xf32> to vector<2x32xf32>
    %6 = arith.addf %3, %5 : vector<2x32xf32>
    %c0_5 = arith.constant 0 : index
    %c0_6 = arith.constant 0 : index
    %7 = vector.load %arg5[%c0_5, %c0_6] : memref<2x32xf32, #tpu.memory_space<vmem>>, vector<2x32xf32>
    tpu.vector_store %arg5[%c0_5, %c0_6], %6 {strides = array<i32>} : memref<2x32xf32, #tpu.memory_space<vmem>>, vector<2x32xf32>,
    %c0_i32_7 = arith.constant 0 : i32
    %8 = arith.cmpi eq, %arg2, %c0_i32_7 : i32
    %9 = arith.extui %8 : i1 to i32
    %c0_i32_8 = arith.constant 0 : i32
    %10 = arith.cmpi ne, %9, %c0_i32_8 : i32
    scf.if %10 {
      %c0_9 = arith.constant 0 : index
      %c0_10 = arith.constant 0 : index
      %11 = vector.load %arg5[%c0_9, %c0_10] : memref<2x32xf32, #tpu.memory_space<vmem>>, vector<2x32xf32>
      %cst_11 = arith.constant 1.250000e-01 : f32
      %12 = vector.broadcast %cst_11 : f32 to vector<2x32xf32>
      %13 = arith.mulf %11, %12 : vector<2x32xf32>
      %c0_12 = arith.constant 0 : index
      %c0_13 = arith.constant 0 : index
      %14 = vector.load %arg4[%c0_12, %c0_13] : memref<2x32xf32, #tpu.memory_space<vmem>>, vector<2x32xf32>
      tpu.vector_store %arg4[%c0_12, %c0_13], %13 {strides = array<i32>} : memref<2x32xf32, #tpu.memory_space<vmem>>, vector<2x32xf32>,
    } else {
    }
    return
  }
  func.func @transform_0(%arg0: i32, %arg1: i32, %arg2: i32) -> (i32, i32, i32) {
    %c0_i32 = arith.constant 0 : i32
    return %arg0, %arg2, %arg1 : i32, i32, i32
  }
  func.func @transform_1(%arg0: i32, %arg1: i32, %arg2: i32) -> (i32, i32) {
    %c0_i32 = arith.constant 0 : i32
    return %arg0, %arg1 : i32, i32
  }
}

</mosaic_0001>

<bundles_post_ra>
// kernel: tpu_custom_call.1
= control target key start
LH: loop header
LB: loop body
LE: loop exit
PB: predicated region body
PF: predicated region fallthrough
CT: control target
= control target key end

     0   :  { %6 = vsyncpa [#allocation4], 0  ;;  %s161_s0 = inlined_call_operand.hbm [shape: f32[2,8,32], index: 0, kind: input, shape index: {}]   ;;  %s162_s1 = inlined_call_operand.hbm [shape: f32[2,32], index: 1, kind: output, shape index: {}]  }
   0x1   :  { %7 = vsyncpa [#allocation5], 0  ;;  %s12_s8 = sshll.u32 %s161_s0, 4  ;;  %s137_s9 = smov [#allocation3]   ;;  %s13_s8 = int_to_ptr.hbm [resolvable:$true] %s12_s8 }
   0x2   :  { %s14_s10 = sshll.u32 %s137_s9, 4  ;;  %s138_s11 = smov 128   ;;  %s15_s10 = int_to_ptr.vmem [resolvable:$true] %s14_s10 }
   0x3   :  { %s139_s12 = smov 8  }
   0x4   :  { %20 = dma.hbm_to_vmem [thread:$0]  %s13_s8, 256, %s15_s10, [#allocation4], %s138_s11, %s138_s11, %s139_s12  }
   0x5   :  { %133 = dma.done.wait [#allocation4], 256  }
   0x6   :  { %134 = vsyncadd [#allocation4], 4294967040  ;;  %vm29_vm0 = vcmask 254976   ;;  %v140_v0 = vmov 0.0   ;;  %vm34_vm1 = vcmask 261120   ;;  %v32_v1 = vld [vmem:[#allocation3] sm:$0xff] }
   0x7   :  { %30 = vst.msk [vmem:[#allocation2] sm:$0x3] %vm29_vm0, %v140_v0  ;;  %v33_v2 = vld [vmem:[#allocation3 + $0x8] sm:$0xff]  ;;  %v35_v3 = vsel %vm34_vm1, %v32_v1, 0.0  ;;  %vm51_vm2 = vcmask 1041409   ;;  %s141_s0 = smov [#allocation6]  }
   0x8   :  { %v42_v4 = vsel %vm34_vm1, %v33_v2, 0.0  ;;  %v36_v5 = vrot.slane %v35_v3, 4  ;;  %s68_s13 = sshll.u32 %s141_s0, 4  ;;  %s70_s16 = sshll.u32 %s162_s1, 4  ;;  %s69_s13 = int_to_ptr.vmem [resolvable:$true] %s68_s13  ;;  %s71_s16 = int_to_ptr.hbm [resolvable:$true] %s70_s16 }
   0x9   :  { %v43_v6 = vrot.slane %v42_v4, 4 }
   0xa   :  { %v37_v7 = vadd.f32 %v36_v5, %v35_v3 }
   0xb   :  { %v44_v8 = vadd.f32 %v43_v6, %v42_v4 }
   0xc   :  { %v38_v9 = vrot.slane %v37_v7, 2 }
   0xd   :  { %v45_v10 = vrot.slane %v44_v8, 2 }
   0xe   :  { %v39_v11 = vadd.f32 %v38_v9, %v37_v7  ;;  %v31_v15 = vld [vmem:[#allocation2] sm:$0x3] }
   0xf   :  { %v46_v12 = vadd.f32 %v45_v10, %v44_v8 }
  0x10   :  { %v40_v13 = vrot.slane %v39_v11, 1 }
  0x11   :  { %v47_v14 = vrot.slane %v46_v12, 1 }
  0x12   :  { %v41_v16 = vadd.f32 %v40_v13, %v39_v11 }
  0x13   :  { %v48_v17 = vadd.f32 %v47_v14, %v46_v12 }
  0x15   :  { %v52_v18 = vsel %vm51_vm2, %v48_v17, %v41_v16 }
  0x16   :  { %v54_v19 = vadd.f32 %v52_v18, %v31_v15 }
  0x18   :  { %56 = vst.msk [vmem:[#allocation2] sm:$0x3] %vm29_vm0, %v54_v19 }
  0x1f   :  { %v60_v20 = vld [vmem:[#allocation2] sm:$0x3] }
  0x20   :  { %v61_v21 = vmul.f32 0.125, %v60_v20 }
  0x22   :  { %62 = vst.msk [vmem:[#allocation6] sm:$0x3] %vm29_vm0, %v61_v21 }
  0x23   :  { %73 = dma.vmem_to_hbm [thread:$0]  %s69_s13, 32, %s71_s16, [#allocation5]  }
  0x24   :  { %135 = dma.done.wait [#allocation5], 32  }
  0x25   :  { %136 = vsyncadd [#allocation5], 4294967264 }
  0x26   :  { %78 = vsyncpa [#allocation4], 1 }
  0x27   :  { %79 = vsyncpa [#allocation5], 1 }

</bundles_post_ra>
